<compile_context>
chip_gen: v7x
topology: tpu7x:2x2x1
jax: 0.10.0
libtpu: 0.0.40
codegen_flags: <defaults>
</compile_context>

<pallas_src>
from typing import Dict, Optional, Union

import jax
import jax.numpy as jnp
from jax.experimental import pallas as pl
from jax.experimental.pallas import tpu as pltpu

_MiB = 1024 * 1024

# Below this many total bytes the fixed pallas_call launch / grid-step overhead
# dominates a pure copy, and a native jnp op can additionally fuse into the
# consumer — so bypass Pallas.  (Raised from 64 KiB per review.)
_DEFAULT_MIN_PALLAS_BYTES = 4 * _MiB


# ---------------------------------------------------------------------------
# Hardware introspection helpers (all failure-tolerant)
# ---------------------------------------------------------------------------
def _device_kind() -> str:
    try:
        return jax.devices()[0].device_kind.lower()
    except Exception:
        return ""


def _num_tensorcores() -> int:
    """2 for megacore-style chips (v7x / v4 / v5p), else 1."""
    kind = _device_kind()
    for tag in ("v7", "v4", "v5p"):
        if tag in kind:
            return 2
    return 1


def _vmem_budget_and_limit():
    """Per-generation VMEM budget for the double-buffered Concat tile, plus a
    matching scoped-VMEM limit to request from the compiler."""
    kind = _device_kind()
    if ("v5 lite" in kind) or ("v5e" in kind) or ("v5litepod" in kind):
        budget = 12 * _MiB          # v5e: 16 MiB scoped default, ~820 GB/s HBM
    else:
        budget = 24 * _MiB          # v6e / v7x / unknown
    try:
        # Clamp against physical VMEM when available (v7x: 64 MiB per TC).
        cap = getattr(pltpu.get_tpu_info(), "vmem_capacity_bytes", None)
        if cap:
            budget = min(budget, int(cap) // 4)
    except Exception:
        pass
    # Scoped VMEM to request: enough headroom for Pallas-internal scratch, but
    # never above 32 MiB (safe even on v7x's 64 MiB physical VMEM).
    limit = min(32 * _MiB, max(16 * _MiB, budget + 8 * _MiB))
    return budget, limit


# ---------------------------------------------------------------------------
# Pallas kernels
# ---------------------------------------------------------------------------
def _stack_dma_kernel(*refs):
    """Stack N same-shape 2-D HBM inputs along a new leading axis of the HBM
    output via N overlapping HBM->HBM DMAs (no VMEM round trip).

    refs = (in_0, ..., in_{N-1}, out, copy_sems)
      in_i : (B, D) in HBM (memory_space=pl.ANY)
      out  : (N, B, D) in HBM (memory_space=pl.ANY)
    """
    *in_refs, out_ref, sems = refs
    copies = []
    for i, r in enumerate(in_refs):
        cp = pltpu.make_async_copy(r, out_ref.at[i], sems.at[i])
        cp.start()
        copies.append(cp)
    for cp in copies:
        cp.wait()


def _stack_dma_grid_kernel(*refs):
    """Same as _stack_dma_kernel, but one HBM->HBM copy per grid step (grid
    over the input index) so a 'parallel' grid axis can shard the copies
    across the two TensorCores of a megacore-style chip (v7x)."""
    *in_refs, out_ref, sem = refs
    i = pl.program_id(0)
    for j, r in enumerate(in_refs):
        @pl.when(i == j)
        def _(r=r, j=j):
            cp = pltpu.make_async_copy(r, out_ref.at[j], sem.at[0])
            cp.start()
            cp.wait()


def _concat_dma_kernel(*refs):
    """Concat N same-shape (B, D) HBM inputs along the last axis of the
    (B, N*D) HBM output as N overlapping *strided* HBM->HBM DMAs.
    Zero VMEM, zero grid steps.

    refs = (in_0, ..., in_{N-1}, out, copy_sems)
    """
    *in_refs, out_ref, sems = refs
    d = in_refs[0].shape[-1]
    copies = []
    for i, r in enumerate(in_refs):
        cp = pltpu.make_async_copy(r, out_ref.at[:, i * d:(i + 1) * d], sems.at[i])
        cp.start()
        copies.append(cp)
    for cp in copies:
        cp.wait()


def _concat_tiled_kernel(*refs):
    """Concat N same-shape (TB, D) VMEM tiles along the last (lane) axis.

    refs = (in_0, ..., in_{N-1}, out) with in_i : (TB, D), out : (TB, N*D).
    Called on a 1-D batch grid; Pallas double-buffers HBM<->VMEM around it.
    """
    *in_refs, out_ref = refs
    d = in_refs[0].shape[-1]
    for i, r in enumerate(in_refs):
        out_ref[:, i * d:(i + 1) * d] = r[...]


# ---------------------------------------------------------------------------
# Tile sizing helpers
# ---------------------------------------------------------------------------
def _sublane_multiple(dtype) -> int:
    # f32 -> 8, bf16 -> 16, int8/fp8 -> 32 sublane packing.
    return max(8, 32 // jnp.dtype(dtype).itemsize)


def _round_up(x: int, m: int) -> int:
    return -(-x // m) * m


def _choose_batch_tile(b: int, n: int, d: int, dtype, budget_bytes: int,
                       num_cores: int) -> int:
    """Pick a batch tile so the double-buffered pipelined footprint (inputs +
    output, x2 buffering) stays under `budget_bytes`, never blowing up to the
    full batch when rows are too big, and leaving >= num_cores grid steps so a
    'parallel' grid axis can shard across TensorCores."""
    itemsize = jnp.dtype(dtype).itemsize
    sub = _sublane_multiple(dtype)
    per_row = 2 * 2 * n * d * itemsize      # (inputs n*d + output n*d) x 2 buffers
    tb = (budget_bytes // max(per_row, 1) // sub) * sub
    if tb <= 0:
        # Rows already exceed the budget: use the smallest layout-legal tile
        # (NOT the full batch, which would guarantee a VMEM blow-up).
        tb = sub
    if num_cores >= 2:
        # Keep at least `num_cores` grid steps so megacore sharding has work.
        per_core = _round_up(-(-b // num_cores), sub)
        tb = min(tb, max(per_core, sub))
    if tb >= b:
        return b                            # full-batch block is always layout-legal
    return tb


# ---------------------------------------------------------------------------
# Aggregation wrappers (the `agg` modules MaybeAgg wraps)
# ---------------------------------------------------------------------------
def _check_same(tensors):
    b, d = tensors[0].shape
    dtype = tensors[0].dtype
    for t in tensors:
        assert t.shape == (b, d) and t.dtype == dtype, "all tensors must match"
    return b, d, dtype


class Stack:
    """Stack(dim=0) over the values of a dict of same-shape 2-D tensors."""

    def __init__(self, min_pallas_bytes: int = _DEFAULT_MIN_PALLAS_BYTES,
                 grid_over_inputs: Optional[bool] = None):
        self.min_pallas_bytes = min_pallas_bytes
        # None -> auto (use the grid variant only on multi-TensorCore chips).
        self.grid_over_inputs = grid_over_inputs

    def __call__(self, inputs: Dict[str, jnp.ndarray]) -> jnp.ndarray:
        tensors = list(inputs.values())  # insertion order, like a torch Dict
        n = len(tensors)
        b, d, dtype = _check_same(tensors)
        total_bytes = n * b * d * jnp.dtype(dtype).itemsize

        if total_bytes < self.min_pallas_bytes:
            # Tiny input: launch overhead dominates; let XLA fuse the native op.
            return jnp.stack(tensors, axis=0)

        cost = pl.CostEstimate(flops=0, transcendentals=0,
                               bytes_accessed=2 * total_bytes)
        use_grid = self.grid_over_inputs
        if use_grid is None:
            use_grid = (_num_tensorcores() >= 2) and (n >= 2)

        if use_grid:
            return pl.pallas_call(
                _stack_dma_grid_kernel,
                out_shape=jax.ShapeDtypeStruct((n, b, d), dtype),
                grid=(n,),
                in_specs=[pl.BlockSpec(memory_space=pl.ANY) for _ in range(n)],
                out_specs=pl.BlockSpec(memory_space=pl.ANY),
                scratch_shapes=[pltpu.SemaphoreType.DMA((1,))],
                compiler_params=pltpu.CompilerParams(
                    dimension_semantics=("parallel",)),
                cost_estimate=cost,
            )(*tensors)

        return pl.pallas_call(
            _stack_dma_kernel,
            out_shape=jax.ShapeDtypeStruct((n, b, d), dtype),
            in_specs=[pl.BlockSpec(memory_space=pl.ANY) for _ in range(n)],
            out_specs=pl.BlockSpec(memory_space=pl.ANY),
            scratch_shapes=[pltpu.SemaphoreType.DMA((n,))],
            cost_estimate=cost,
        )(*tensors)


class Concat:
    """Concat(dim=-1) over the values of a dict of same-shape 2-D tensors."""

    def __init__(self, min_pallas_bytes: int = _DEFAULT_MIN_PALLAS_BYTES,
                 use_dma_path: bool = True):
        self.min_pallas_bytes = min_pallas_bytes
        self.use_dma_path = use_dma_path

    def __call__(self, inputs: Dict[str, jnp.ndarray]) -> jnp.ndarray:
        tensors = list(inputs.values())
        n = len(tensors)
        b, d, dtype = _check_same(tensors)
        itemsize = jnp.dtype(dtype).itemsize
        total_bytes = n * b * d * itemsize

        if total_bytes < self.min_pallas_bytes:
            return jnp.concatenate(tensors, axis=-1)

        if d % 128 != 0:
            # Non-lane-aligned feature width -> masked vst + XLU shuffles in a
            # Pallas kernel; XLA's native concat is at least as good here.
            # TODO(synk): pad D up to a multiple of 128 inside the kernel instead.
            return jnp.concatenate(tensors, axis=-1)

        cost = pl.CostEstimate(flops=0, transcendentals=0,
                               bytes_accessed=2 * total_bytes)

        if self.use_dma_path and d * itemsize >= 512:
            # Zero-VMEM fast path: N overlapping strided HBM->HBM DMAs.
            return pl.pallas_call(
                _concat_dma_kernel,
                out_shape=jax.ShapeDtypeStruct((b, n * d), dtype),
                in_specs=[pl.BlockSpec(memory_space=pl.ANY) for _ in range(n)],
                out_specs=pl.BlockSpec(memory_space=pl.ANY),
                scratch_shapes=[pltpu.SemaphoreType.DMA((n,))],
                cost_estimate=cost,
            )(*tensors)

        # Batch-tiled, double-buffered VMEM pipeline (lane-aligned narrow rows).
        budget, vmem_limit = _vmem_budget_and_limit()
        num_cores = _num_tensorcores()
        tb = _choose_batch_tile(b, n, d, dtype, budget, num_cores)
        grid = (pl.cdiv(b, tb),)

        in_specs = [pl.BlockSpec((tb, d), lambda i: (i, 0)) for _ in range(n)]
        out_spec = pl.BlockSpec((tb, n * d), lambda i: (i, 0))

        return pl.pallas_call(
            _concat_tiled_kernel,
            out_shape=jax.ShapeDtypeStruct((b, n * d), dtype),
            grid=grid,
            in_specs=in_specs,
            out_specs=out_spec,
            compiler_params=pltpu.CompilerParams(
                dimension_semantics=("parallel",),
                vmem_limit_bytes=vmem_limit),
            cost_estimate=cost,
        )(*tensors)


# ---------------------------------------------------------------------------
# MaybeAgg
# ---------------------------------------------------------------------------
class MaybeAgg:
    """Conditionally applies `agg` if the input is a dict of tensors."""

    def __init__(self, agg):
        self.agg = agg

    def __call__(self, inputs: Union[Dict[str, jnp.ndarray], jnp.ndarray]) -> jnp.ndarray:
        if isinstance(inputs, dict):
            return self.agg(inputs)
        if not isinstance(inputs, (jnp.ndarray, jax.Array)):
            raise RuntimeError(
                "Inputs must be either a dictionary of tensors or a single tensor."
            )
        return inputs  # identity passthrough, exactly like the torch module


# ---------------------------------------------------------------------------
# Demo / self-test
# ---------------------------------------------------------------------------
if __name__ == "__main__":
    key = jax.random.PRNGKey(0)
    k1, k2, k3, k4 = jax.random.split(key, 4)

    # Small but layout-friendly shapes: batch=16, hidden=128 (lane-dense output).
    B, D = 16, 128
    t1 = jax.random.normal(k1, (B, D), dtype=jnp.float32)
    t2 = jax.random.normal(k2, (B, D), dtype=jnp.float32)
    t3 = jax.random.normal(k3, (B, D), dtype=jnp.float32)
    input_dict = {"a": t1, "b": t2, "c": t3}

    ref_stacked = jnp.stack([t1, t2, t3], axis=0)
    ref_concat = jnp.concatenate([t1, t2, t3], axis=-1)

    # Case 1: dict input -> Stack(dim=0), grid-free HBM->HBM DMA kernel
    # (min_pallas_bytes=0 forces the Pallas path at these small demo shapes).
    maybe_stack = MaybeAgg(agg=Stack(min_pallas_bytes=0, grid_over_inputs=False))
    stacked = maybe_stack(input_dict)
    jax.block_until_ready(stacked)
    assert stacked.shape == (3, B, D)
    assert jnp.array_equal(stacked, ref_stacked)

    # Case 1b: Stack via the grid-over-inputs variant (the one megacore chips use).
    stacked_grid = MaybeAgg(agg=Stack(min_pallas_bytes=0, grid_over_inputs=True))(input_dict)
    jax.block_until_ready(stacked_grid)
    assert jnp.array_equal(stacked_grid, ref_stacked)

    # Case 1c: Concat(dim=-1) via the zero-VMEM strided HBM->HBM DMA fast path
    # (D=128 f32 -> 512 B rows, so this path is taken automatically).
    maybe_concat = MaybeAgg(agg=Concat(min_pallas_bytes=0))
    concatenated = maybe_concat(input_dict)
    jax.block_until_ready(concatenated)
    assert concatenated.shape == (B, 3 * D)
    assert jnp.array_equal(concatenated, ref_concat)

    # Case 1d: Concat via the batch-tiled VMEM pipeline (forced).
    concat_tiled = MaybeAgg(agg=Concat(min_pallas_bytes=0, use_dma_path=False))(input_dict)
    jax.block_until_ready(concat_tiled)
    assert jnp.array_equal(concat_tiled, ref_concat)

    # Case 1e: bf16 inputs (row < 512 B) auto-dispatch to the tiled VMEM path.
    bf_dict = {k: v.astype(jnp.bfloat16) for k, v in input_dict.items()}
    concat_bf16 = MaybeAgg(agg=Concat(min_pallas_bytes=0))(bf_dict)
    jax.block_until_ready(concat_bf16)
    assert jnp.array_equal(
        concat_bf16, jnp.concatenate(list(bf_dict.values()), axis=-1))

    # Case 1f: default heuristic dispatch (tiny dict -> fused jnp path), same numerics.
    stacked_small = MaybeAgg(agg=Stack())(input_dict)
    concat_small = MaybeAgg(agg=Concat())(input_dict)
    jax.block_until_ready((stacked_small, concat_small))
    assert jnp.array_equal(stacked_small, ref_stacked)
    assert jnp.array_equal(concat_small, ref_concat)

    # Case 2: single tensor input -> returned as is.
    single = jax.random.normal(k4, (B, D), dtype=jnp.float32)
    passthrough = maybe_stack(single)
    jax.block_until_ready(passthrough)
    assert passthrough is single or jnp.array_equal(passthrough, single)

    # Case 3: invalid input -> RuntimeError.
    try:
        maybe_stack([1, 2, 3])
        raise AssertionError("expected RuntimeError")
    except RuntimeError:
        pass

    print("KERNEL_OK")
</pallas_src>

<mosaic_0001>
module attributes {stable_mosaic.version = 11 : i64} {
  func.func @_stack_dma_kernel(%arg0: memref<16x128xf32, #tpu.memory_space<any>>, %arg1: memref<16x128xf32, #tpu.memory_space<any>>, %arg2: memref<16x128xf32, #tpu.memory_space<any>>, %arg3: memref<3x16x128xf32, #tpu.memory_space<any>>, %arg4: memref<3x!tpu.dma_semaphore, #tpu.memory_space<semaphore_mem>>) attributes {dimension_semantics = [], scalar_prefetch = 0 : i64, scratch_operands = 1 : i64, tpu.core_type = #tpu.core_type<tc>} {
    %c0_i32 = arith.constant 0 : i32
    %c0_i32_0 = arith.constant 0 : i32
    %c0_i32_1 = arith.constant 0 : i32
    %c0_i32_2 = arith.constant 0 : i32
    %0 = tpu.memref_slice %arg3[%c0_i32, %c0_i32_1, %c0_i32_2] : memref<3x16x128xf32, #tpu.memory_space<any>> -> memref<1x16x128xf32, #tpu.memory_space<any>>
    %1 = tpu.memref_squeeze %0 : memref<1x16x128xf32, #tpu.memory_space<any>> -> memref<16x128xf32, #tpu.memory_space<any>>
    %2 = tpu.memref_slice %arg4[%c0_i32_0] : memref<3x!tpu.dma_semaphore, #tpu.memory_space<semaphore_mem>> -> memref<1x!tpu.dma_semaphore, #tpu.memory_space<semaphore_mem>>
    %3 = tpu.memref_squeeze %2 : memref<1x!tpu.dma_semaphore, #tpu.memory_space<semaphore_mem>> -> memref<!tpu.dma_semaphore, #tpu.memory_space<semaphore_mem>>
    tpu.enqueue_dma source(%arg0 : memref<16x128xf32, #tpu.memory_space<any>>) target(%1 : memref<16x128xf32, #tpu.memory_space<any>>) target_semaphore(%3 : memref<!tpu.dma_semaphore, #tpu.memory_space<semaphore_mem>>)
    %c1_i32 = arith.constant 1 : i32
    %c1_i32_3 = arith.constant 1 : i32
    %c0_i32_4 = arith.constant 0 : i32
    %c0_i32_5 = arith.constant 0 : i32
    %4 = tpu.memref_slice %arg3[%c1_i32, %c0_i32_4, %c0_i32_5] : memref<3x16x128xf32, #tpu.memory_space<any>> -> memref<1x16x128xf32, #tpu.memory_space<any>>
    %5 = tpu.memref_squeeze %4 : memref<1x16x128xf32, #tpu.memory_space<any>> -> memref<16x128xf32, #tpu.memory_space<any>>
    %6 = tpu.memref_slice %arg4[%c1_i32_3] : memref<3x!tpu.dma_semaphore, #tpu.memory_space<semaphore_mem>> -> memref<1x!tpu.dma_semaphore, #tpu.memory_space<semaphore_mem>>
    %7 = tpu.memref_squeeze %6 : memref<1x!tpu.dma_semaphore, #tpu.memory_space<semaphore_mem>> -> memref<!tpu.dma_semaphore, #tpu.memory_space<semaphore_mem>>
    tpu.enqueue_dma source(%arg1 : memref<16x128xf32, #tpu.memory_space<any>>) target(%5 : memref<16x128xf32, #tpu.memory_space<any>>) target_semaphore(%7 : memref<!tpu.dma_semaphore, #tpu.memory_space<semaphore_mem>>)
    %c2_i32 = arith.constant 2 : i32
    %c2_i32_6 = arith.constant 2 : i32
    %c0_i32_7 = arith.constant 0 : i32
    %c0_i32_8 = arith.constant 0 : i32
    %8 = tpu.memref_slice %arg3[%c2_i32, %c0_i32_7, %c0_i32_8] : memref<3x16x128xf32, #tpu.memory_space<any>> -> memref<1x16x128xf32, #tpu.memory_space<any>>
    %9 = tpu.memref_squeeze %8 : memref<1x16x128xf32, #tpu.memory_space<any>> -> memref<16x128xf32, #tpu.memory_space<any>>
    %10 = tpu.memref_slice %arg4[%c2_i32_6] : memref<3x!tpu.dma_semaphore, #tpu.memory_space<semaphore_mem>> -> memref<1x!tpu.dma_semaphore, #tpu.memory_space<semaphore_mem>>
    %11 = tpu.memref_squeeze %10 : memref<1x!tpu.dma_semaphore, #tpu.memory_space<semaphore_mem>> -> memref<!tpu.dma_semaphore, #tpu.memory_space<semaphore_mem>>
    tpu.enqueue_dma source(%arg2 : memref<16x128xf32, #tpu.memory_space<any>>) target(%9 : memref<16x128xf32, #tpu.memory_space<any>>) target_semaphore(%11 : memref<!tpu.dma_semaphore, #tpu.memory_space<semaphore_mem>>)
    %c0_i32_9 = arith.constant 0 : i32
    %c0_i32_10 = arith.constant 0 : i32
    %c0_i32_11 = arith.constant 0 : i32
    %c0_i32_12 = arith.constant 0 : i32
    %12 = tpu.memref_slice %arg3[%c0_i32_9, %c0_i32_11, %c0_i32_12] : memref<3x16x128xf32, #tpu.memory_space<any>> -> memref<1x16x128xf32, #tpu.memory_space<any>>
    %13 = tpu.memref_squeeze %12 : memref<1x16x128xf32, #tpu.memory_space<any>> -> memref<16x128xf32, #tpu.memory_space<any>>
    %14 = tpu.memref_slice %arg4[%c0_i32_10] : memref<3x!tpu.dma_semaphore, #tpu.memory_space<semaphore_mem>> -> memref<1x!tpu.dma_semaphore, #tpu.memory_space<semaphore_mem>>
    %15 = tpu.memref_squeeze %14 : memref<1x!tpu.dma_semaphore, #tpu.memory_space<semaphore_mem>> -> memref<!tpu.dma_semaphore, #tpu.memory_space<semaphore_mem>>
    tpu.wait_dma2 semaphore(%15 : memref<!tpu.dma_semaphore, #tpu.memory_space<semaphore_mem>>) src(%arg0 : memref<16x128xf32, #tpu.memory_space<any>>) dst(%13 : memref<16x128xf32, #tpu.memory_space<any>>)
    %c1_i32_13 = arith.constant 1 : i32
    %c1_i32_14 = arith.constant 1 : i32
    %c0_i32_15 = arith.constant 0 : i32
    %c0_i32_16 = arith.constant 0 : i32
    %16 = tpu.memref_slice %arg3[%c1_i32_13, %c0_i32_15, %c0_i32_16] : memref<3x16x128xf32, #tpu.memory_space<any>> -> memref<1x16x128xf32, #tpu.memory_space<any>>
    %17 = tpu.memref_squeeze %16 : memref<1x16x128xf32, #tpu.memory_space<any>> -> memref<16x128xf32, #tpu.memory_space<any>>
    %18 = tpu.memref_slice %arg4[%c1_i32_14] : memref<3x!tpu.dma_semaphore, #tpu.memory_space<semaphore_mem>> -> memref<1x!tpu.dma_semaphore, #tpu.memory_space<semaphore_mem>>
    %19 = tpu.memref_squeeze %18 : memref<1x!tpu.dma_semaphore, #tpu.memory_space<semaphore_mem>> -> memref<!tpu.dma_semaphore, #tpu.memory_space<semaphore_mem>>
    tpu.wait_dma2 semaphore(%19 : memref<!tpu.dma_semaphore, #tpu.memory_space<semaphore_mem>>) src(%arg1 : memref<16x128xf32, #tpu.memory_space<any>>) dst(%17 : memref<16x128xf32, #tpu.memory_space<any>>)
    %c2_i32_17 = arith.constant 2 : i32
    %c2_i32_18 = arith.constant 2 : i32
    %c0_i32_19 = arith.constant 0 : i32
    %c0_i32_20 = arith.constant 0 : i32
    %20 = tpu.memref_slice %arg3[%c2_i32_17, %c0_i32_19, %c0_i32_20] : memref<3x16x128xf32, #tpu.memory_space<any>> -> memref<1x16x128xf32, #tpu.memory_space<any>>
    %21 = tpu.memref_squeeze %20 : memref<1x16x128xf32, #tpu.memory_space<any>> -> memref<16x128xf32, #tpu.memory_space<any>>
    %22 = tpu.memref_slice %arg4[%c2_i32_18] : memref<3x!tpu.dma_semaphore, #tpu.memory_space<semaphore_mem>> -> memref<1x!tpu.dma_semaphore, #tpu.memory_space<semaphore_mem>>
    %23 = tpu.memref_squeeze %22 : memref<1x!tpu.dma_semaphore, #tpu.memory_space<semaphore_mem>> -> memref<!tpu.dma_semaphore, #tpu.memory_space<semaphore_mem>>
    tpu.wait_dma2 semaphore(%23 : memref<!tpu.dma_semaphore, #tpu.memory_space<semaphore_mem>>) src(%arg2 : memref<16x128xf32, #tpu.memory_space<any>>) dst(%21 : memref<16x128xf32, #tpu.memory_space<any>>)
    return
  }
}

</mosaic_0001>

<bundles_post_ra>
// kernel: tpu_custom_call.1
= control target key start
LH: loop header
LB: loop body
LE: loop exit
PB: predicated region body
PF: predicated region fallthrough
CT: control target
= control target key end

     0   :  { %s94_s15 = smov [#allocation2]   ;;  %s95_s16 = smov [#allocation3]   ;;  %s139_s0 = inlined_call_operand.hbm [shape: f32[16,128], index: 0, kind: input, shape index: {}]   ;;  %s140_s3 = inlined_call_operand.hbm [shape: f32[3,16,128], index: 3, kind: output, shape index: {}]   ;;  %s141_s1 = inlined_call_operand.hbm [shape: f32[16,128], index: 1, kind: input, shape index: {}]   ;;  %s142_s2 = inlined_call_operand.hbm [shape: f32[16,128], index: 2, kind: input, shape index: {}]  }
   0x1   :  { %s21_s14 = scalar_lea.hbm %s140_s3, 256  ;;  %s96_s17 = smov 0  }
   0x2   :  { %20 = dma.general %s139_s0, 256, %s140_s3, %s94_s15, %s95_s16, [#allocation4], %s96_s17, 0  }
   0x3   :  { %s36_s24 = scalar_lea.hbm %s140_s3, 512  ;;  %s97_s25 = smov [#allocation2 + $0x1]  }
   0x4   :  { %s98_s26 = smov [#allocation5]   ;;  %s99_s29 = smov [#allocation2 + $0x2]  }
   0x5   :  { %35 = dma.general %s141_s1, 256, %s21_s14, %s97_s25, %s98_s26, [#allocation6], %s96_s17, 0  }
   0x6   :  { %s100_s30 = smov [#allocation7]  }
   0x7   :  { %50 = dma.general %s142_s2, 256, %s36_s24, %s99_s29, %s100_s30, [#allocation8], %s96_s17, 0  }
   0x8   :  { %88 = dma.done.wait [#allocation2], 256 }
   0x9   :  { %89 = vsyncadd [#allocation2], 4294967040 }
   0xa   :  { %90 = dma.done.wait [#allocation2 + $0x1], 256 }
   0xb   :  { %91 = vsyncadd [#allocation2 + $0x1], 4294967040 }
   0xc   :  { %92 = dma.done.wait [#allocation2 + $0x2], 256 }
   0xd   :  { %93 = vsyncadd [#allocation2 + $0x2], 4294967040 }
   0xe   :  { %58 = vsyncmov [#allocation2] }
  0x11   :  { %s59_s0 = vpop.sfrf %58 }
  0x12   :  { %p78_p0 = scmp.ne.s32.totalorder %s59_s0, 0 }
  0x14   :  { %63 = shalt.err (%p78_p0)  }
  0x15   :  { %65 = vsyncmov [#allocation2 + $0x1] }
  0x18   :  { %s66_s3 = vpop.sfrf %65 }
  0x19   :  { %p79_p1 = scmp.ne.s32.totalorder %s66_s3, 0 }
  0x1b   :  { %70 = shalt.err (%p79_p1)  }
  0x1c   :  { %72 = vsyncmov [#allocation2 + $0x2] }
  0x1f   :  { %s73_s1 = vpop.sfrf %72 }
  0x20   :  { %p80_p2 = scmp.ne.s32.totalorder %s73_s1, 0 }
  0x22   :  { %77 = shalt.err (%p80_p2)  }

</bundles_post_ra>
